<compile_context>
chip_gen: v6e
topology: v6e:2x2x1
jax: 0.10.0
libtpu: 0.0.40
codegen_flags: <defaults>
</compile_context>

<pallas_src>
import jax
import jax.numpy as jnp
from jax.experimental import pallas as pl
from jax.experimental.pallas import tpu as pltpu


def _elementwise_kernel(x_ref, add_ref, sub_ref, mul_ref, div_ref, cmp_ref):
    x = x_ref[...]
    add_ref[...] = x + 10.0
    sub_ref[...] = x - 5.0
    mul_ref[...] = x * 2.0
    # multiply by 0.5 instead of divide: single VALU op, bit-exact for /2
    div_ref[...] = x * 0.5
    # TODO(synk): emit jnp.bool_ directly once Mosaic bool stores are a safe
    # lowering path; int8 in-kernel keeps compilation robust, wrapper casts.
    cmp_ref[...] = (x > 0).astype(jnp.int8)


def _max_block_elems():
    # Per-grid-step element budget. With 1 f32 input + 4 f32 outputs + 1 i8
    # output, double-buffered VMEM ~= 42 B/elem:
    #   512K elems -> ~21 MiB  (fits v6e/v7x 32 MiB default scoped limit,
    #                           comfortably under v7x's 64 MiB physical VMEM)
    #   256K elems -> ~10.5 MiB (fits v5e's 16 MiB default scoped limit)
    try:
        kind = jax.devices()[0].device_kind.lower()
    except Exception:
        kind = ""
    if "v6" in kind or "v7" in kind:
        return 512 * 1024
    return 256 * 1024


def _pick_block_rows(rows, max_block_rows):
    # rows is a multiple of 8; return the largest multiple-of-8 divisor of
    # rows that is <= max_block_rows. When rows >= 16, cap at rows // 2 so the
    # grid has >= 2 blocks and the "parallel" axis shards across both v7x TCs.
    cap = min(max_block_rows, rows if rows < 16 else rows // 2)
    cap = max(8, (cap // 8) * 8)
    best = 8
    d = 8
    while d <= cap:
        if rows % d == 0:
            best = d
        d += 8
    return best


def pt_module_forward(x):
    """Replicates PtModule.forward: (x+10, x-5, x*2, x/2, x>0)."""
    # NOTE: assumes floating-point x (as in the reference test).
    # TODO(synk): integer x would need a float division output to match
    # PyTorch true-division semantics.
    orig_shape = x.shape
    n = x.size
    max_elems = _max_block_elems()

    # ---- layout selection: zero-copy fast path whenever possible ----------
    width = rows = None
    if n % 128 == 0:
        # Prefer (width, rows) with rows a multiple of 8: no padding, and the
        # array tiles into multiple full (block_rows, width) blocks.
        for w in (1024, 512, 256, 128):
            if n % (8 * w) == 0:
                width, rows = w, n // w
                break
        if width is None and n <= max_elems:
            # 128-aligned but rows not a multiple of 8: still zero-copy as a
            # single full-array block (block shape == full array dims).
            w = max(w for w in (1024, 512, 256, 128) if n % w == 0)
            width, rows = w, n // w

    if width is None:
        # Ragged fallback: pad the flat array to a multiple of 8*128 = 1024
        # elements (minimal granularity), un-pad outputs in the wrapper.
        width = 128
        rows = pl.cdiv(n, 8 * width) * 8
    padded_n = rows * width

    flat = x.reshape(-1)
    if padded_n != n:
        flat = jnp.pad(flat, (0, padded_n - n))
    x2 = flat.reshape(rows, width)              # free: linear order unchanged

    if rows % 8 == 0:
        block_rows = _pick_block_rows(rows, max(8, max_elems // width))
    else:
        block_rows = rows                       # single full-array block
    grid = (rows // block_rows,)
    spec = pl.BlockSpec((block_rows, width), lambda i: (i, 0))

    f_out = jax.ShapeDtypeStruct((rows, width), x.dtype)
    out_shapes = (
        f_out,                                          # addition
        f_out,                                          # subtraction
        f_out,                                          # multiplication
        f_out,                                          # division
        jax.ShapeDtypeStruct((rows, width), jnp.int8),  # comparison (as i8)
    )

    add2, sub2, mul2, div2, cmp2 = pl.pallas_call(
        _elementwise_kernel,
        out_shape=out_shapes,
        grid=grid,
        in_specs=[spec],
        out_specs=(spec, spec, spec, spec, spec),
        compiler_params=pltpu.CompilerParams(
            # independent tiles -> shard grid axis across TCs (megacore / v7x)
            dimension_semantics=("parallel",),
        ),
    )(x2)

    def unflatten(a, dtype=None):
        if padded_n != n:
            a = a.reshape(-1)[:n]               # only in the padded fallback
        if dtype is not None:
            a = a.astype(dtype)
        return a.reshape(orig_shape)

    addition = unflatten(add2)
    subtraction = unflatten(sub2)
    multiplication = unflatten(mul2)
    division = unflatten(div2)
    comparison = unflatten(cmp2, jnp.bool_)
    return addition, subtraction, multiplication, division, comparison


if __name__ == "__main__":
    key = jax.random.PRNGKey(0)
    x = jax.random.normal(key, (2, 4, 16, 16), dtype=jnp.float32)

    outs = jax.jit(pt_module_forward)(x)
    outs = jax.block_until_ready(outs)
    addition, subtraction, multiplication, division, comparison = outs

    # correctness checks against plain-JAX reference
    assert jnp.allclose(addition, x + 10)
    assert jnp.allclose(subtraction, x - 5)
    assert jnp.allclose(multiplication, x * 2)
    assert jnp.allclose(division, x / 2)
    assert comparison.dtype == jnp.bool_
    assert jnp.array_equal(comparison, x > 0)

    print("KERNEL_OK")
</pallas_src>

<mosaic_0001>
module attributes {stable_mosaic.version = 11 : i64} {
  func.func @_elementwise_kernel(%arg0: i32, %arg1: memref<8x256xf32, #tpu.memory_space<vmem>>, %arg2: memref<8x256xf32, #tpu.memory_space<vmem>>, %arg3: memref<8x256xf32, #tpu.memory_space<vmem>>, %arg4: memref<8x256xf32, #tpu.memory_space<vmem>>, %arg5: memref<8x256xf32, #tpu.memory_space<vmem>>, %arg6: memref<8x256xi8, #tpu.memory_space<vmem>>) attributes {dimension_semantics = [#tpu.dimension_semantics<parallel>], iteration_bounds = array<i64: 1>, scalar_prefetch = 0 : i64, scratch_operands = 0 : i64, tpu.core_type = #tpu.core_type<tc>, window_params = [{transform_indices = @transform_0, window_bounds = array<i64: 8, 256>}, {transform_indices = @transform_1, window_bounds = array<i64: 8, 256>}, {transform_indices = @transform_2, window_bounds = array<i64: 8, 256>}, {transform_indices = @transform_3, window_bounds = array<i64: 8, 256>}, {transform_indices = @transform_4, window_bounds = array<i64: 8, 256>}, {transform_indices = @transform_5, window_bounds = array<i64: 8, 256>}]} {
    %c0 = arith.constant 0 : index
    %c0_0 = arith.constant 0 : index
    %0 = vector.load %arg1[%c0, %c0_0] : memref<8x256xf32, #tpu.memory_space<vmem>>, vector<8x256xf32>
    %cst = arith.constant 1.000000e+01 : f32
    %1 = vector.broadcast %cst : f32 to vector<8x256xf32>
    %2 = arith.addf %0, %1 : vector<8x256xf32>
    %c0_1 = arith.constant 0 : index
    %c0_2 = arith.constant 0 : index
    %3 = vector.load %arg2[%c0_1, %c0_2] : memref<8x256xf32, #tpu.memory_space<vmem>>, vector<8x256xf32>
    tpu.vector_store %arg2[%c0_1, %c0_2], %2 {strides = array<i32>} : memref<8x256xf32, #tpu.memory_space<vmem>>, vector<8x256xf32>,
    %cst_3 = arith.constant 5.000000e+00 : f32
    %4 = vector.broadcast %cst_3 : f32 to vector<8x256xf32>
    %5 = arith.subf %0, %4 : vector<8x256xf32>
    %c0_4 = arith.constant 0 : index
    %c0_5 = arith.constant 0 : index
    %6 = vector.load %arg3[%c0_4, %c0_5] : memref<8x256xf32, #tpu.memory_space<vmem>>, vector<8x256xf32>
    tpu.vector_store %arg3[%c0_4, %c0_5], %5 {strides = array<i32>} : memref<8x256xf32, #tpu.memory_space<vmem>>, vector<8x256xf32>,
    %cst_6 = arith.constant 2.000000e+00 : f32
    %7 = vector.broadcast %cst_6 : f32 to vector<8x256xf32>
    %8 = arith.mulf %0, %7 : vector<8x256xf32>
    %c0_7 = arith.constant 0 : index
    %c0_8 = arith.constant 0 : index
    %9 = vector.load %arg4[%c0_7, %c0_8] : memref<8x256xf32, #tpu.memory_space<vmem>>, vector<8x256xf32>
    tpu.vector_store %arg4[%c0_7, %c0_8], %8 {strides = array<i32>} : memref<8x256xf32, #tpu.memory_space<vmem>>, vector<8x256xf32>,
    %cst_9 = arith.constant 5.000000e-01 : f32
    %10 = vector.broadcast %cst_9 : f32 to vector<8x256xf32>
    %11 = arith.mulf %0, %10 : vector<8x256xf32>
    %c0_10 = arith.constant 0 : index
    %c0_11 = arith.constant 0 : index
    %12 = vector.load %arg5[%c0_10, %c0_11] : memref<8x256xf32, #tpu.memory_space<vmem>>, vector<8x256xf32>
    tpu.vector_store %arg5[%c0_10, %c0_11], %11 {strides = array<i32>} : memref<8x256xf32, #tpu.memory_space<vmem>>, vector<8x256xf32>,
    %cst_12 = arith.constant 0.000000e+00 : f32
    %13 = vector.broadcast %cst_12 : f32 to vector<8x256xf32>
    %14 = arith.cmpf ogt, %0, %13 : vector<8x256xf32>
    %15 = arith.extui %14 : vector<8x256xi1> to vector<8x256xi8>
    %c0_13 = arith.constant 0 : index
    %c0_14 = arith.constant 0 : index
    %16 = vector.load %arg6[%c0_13, %c0_14] : memref<8x256xi8, #tpu.memory_space<vmem>>, vector<8x256xi8>
    tpu.vector_store %arg6[%c0_13, %c0_14], %15 {strides = array<i32>} : memref<8x256xi8, #tpu.memory_space<vmem>>, vector<8x256xi8>,
    return
  }
  func.func @transform_0(%arg0: i32) -> (i32, i32) {
    %c0_i32 = arith.constant 0 : i32
    %c0_i32_0 = arith.constant 0 : i32
    return %arg0, %c0_i32 : i32, i32
  }
  func.func @transform_1(%arg0: i32) -> (i32, i32) {
    %c0_i32 = arith.constant 0 : i32
    %c0_i32_0 = arith.constant 0 : i32
    return %arg0, %c0_i32 : i32, i32
  }
  func.func @transform_2(%arg0: i32) -> (i32, i32) {
    %c0_i32 = arith.constant 0 : i32
    %c0_i32_0 = arith.constant 0 : i32
    return %arg0, %c0_i32 : i32, i32
  }
  func.func @transform_3(%arg0: i32) -> (i32, i32) {
    %c0_i32 = arith.constant 0 : i32
    %c0_i32_0 = arith.constant 0 : i32
    return %arg0, %c0_i32 : i32, i32
  }
  func.func @transform_4(%arg0: i32) -> (i32, i32) {
    %c0_i32 = arith.constant 0 : i32
    %c0_i32_0 = arith.constant 0 : i32
    return %arg0, %c0_i32 : i32, i32
  }
  func.func @transform_5(%arg0: i32) -> (i32, i32) {
    %c0_i32 = arith.constant 0 : i32
    %c0_i32_0 = arith.constant 0 : i32
    return %arg0, %c0_i32 : i32, i32
  }
}

</mosaic_0001>

<bundles_post_ra>
// kernel: pt_module_forward.1
= control target key start
LH: loop header
LB: loop body
LE: loop exit
PB: predicated region body
PF: predicated region fallthrough
CT: control target
= control target key end

     0   :  { %v69_v10 = vmov 0   ;;  %s133_s0 = inlined_call_operand.vmem [shape: f32[8,256], index: 0, kind: input, shape index: {}]   ;;  %s134_s1 = inlined_call_operand.vmem [shape: f32[8,256], index: 1, kind: output, shape index: {0}]   ;;  %s135_s2 = inlined_call_operand.vmem [shape: f32[8,256], index: 2, kind: output, shape index: {1}]   ;;  %s136_s3 = inlined_call_operand.vmem [shape: f32[8,256], index: 3, kind: output, shape index: {2}]   ;;  %s137_s4 = inlined_call_operand.vmem [shape: f32[8,256], index: 4, kind: output, shape index: {3}]   ;;  %s138_s5 = inlined_call_operand.vmem [shape: s8[8,256], index: 5, kind: output, shape index: {4}]  }
   0x1   :  { %v15_v0 = vld [vmem:[%s133_s0] sm:$0xff]  ;;  %v16_v1 = vld [vmem:[%s133_s0 + $0x8] sm:$0xff] }
   0x2   :  { %v17_v2 = vadd.f32 10.0, %v15_v0  ;;  %v18_v3 = vadd.f32 10.0, %v16_v1  ;;  %v66_v4 = vadd.f32 -5.0, %v15_v0  ;;  %v67_v5 = vadd.f32 -5.0, %v16_v1 }
   0x3   :  { %v25_v6 = vmul.f32 2.0, %v15_v0  ;;  %v26_v7 = vmul.f32 2.0, %v16_v1  ;;  %v29_v8 = vmul.f32 0.5, %v15_v0  ;;  %v30_v9 = vmul.f32 0.5, %v16_v1 }
   0x4   :  { %19 = vst [vmem:[%s134_s1] sm:$0xff] %v17_v2  ;;  %20 = vst [vmem:[%s134_s1 + $0x8] sm:$0xff] %v18_v3  ;;  %vm33_vm0 = vcmp.gt.f32.partialorder %v15_v0, 0.0  ;;  %vm34_vm1 = vcmp.gt.f32.partialorder %v16_v1, 0.0 }
   0x5   :  { %23 = vst [vmem:[%s135_s2] sm:$0xff] %v66_v4  ;;  %24 = vst [vmem:[%s135_s2 + $0x8] sm:$0xff] %v67_v5 }
   0x6   :  { %27 = vst [vmem:[%s136_s3] sm:$0xff] %v25_v6  ;;  %28 = vst [vmem:[%s136_s3 + $0x8] sm:$0xff] %v26_v7 }
   0x7   :  { %31 = vst [vmem:[%s137_s4] sm:$0xff] %v29_v8  ;;  %32 = vst [vmem:[%s137_s4 + $0x8] sm:$0xff] %v30_v9 }
   0x8   :  { %vm35_vm2 = vmpackc.low %vm33_vm0, %vm33_vm0 }
   0x9   :  { %vm36_vm3 = vmpackc.even %vm35_vm2, %vm35_vm2 }
   0xa   :  { %vm37_vm4 = vmpackc.low %vm34_vm1, %vm34_vm1  ;;  %v39_v11 = vsel %vm36_vm3, 16843009, %v69_v10 }
   0xb   :  { %vm38_vm5 = vmpackc.even %vm37_vm4, %vm37_vm4  ;;  %v41_v12 = vunpack.c.0.s8 %v39_v11 }
   0xc   :  { %v40_v13 = vsel %vm38_vm5, 16843009, %v69_v10 }
   0xd   :  { %v42_v14 = vunpack.c.0.s8 %v40_v13 }
   0xf   :  { %v43_v15 = vpack.c.b16 %v42_v14, %v41_v12 }
  0x11   :  { %v44_v16 = vpack.c.b8 %v43_v15, %v43_v15 }
  0x13   :  { %45 = vst [vmem:[%s138_s5] sm:$0xf] %v44_v16 }

</bundles_post_ra>
